<compile_context>
chip_gen: v7x
topology: tpu7x:2x2x1
jax: 0.10.0
libtpu: 0.0.40
codegen_flags: <defaults>
</compile_context>

<pallas_src>
import functools

import jax
import jax.numpy as jnp
from jax import lax
from jax.experimental import pallas as pl
from jax.experimental.pallas import tpu as pltpu


_NEG_BIG = -1.0e30        # finite "-inf" for causal masking (NaN-safe in flash)
_MASK_VAL = -1.0e9        # exact torch masked_fill value
_VMEM_LIMIT = 64 * 1024 * 1024


def _pick_tile(dim, target, align):
    """Largest multiple of `align` <= target that divides `dim`, else full dim."""
    if dim <= target:
        return dim
    cand = (target // align) * align
    while cand >= align:
        if dim % cand == 0:
            return cand
        cand -= align
    return dim


# ---------------------------------------------------------------------------
# Tiled, pipelined projection matmul (bf16 MXU operands, f32 accumulation)
# ---------------------------------------------------------------------------

def _matmul_kernel(x_ref, w_ref, o_ref, acc_ref):
    @pl.when(pl.program_id(2) == 0)
    def _():
        acc_ref[...] = jnp.zeros_like(acc_ref)

    acc_ref[...] += jnp.dot(x_ref[...].astype(jnp.bfloat16),
                            w_ref[...].astype(jnp.bfloat16),
                            preferred_element_type=jnp.float32)

    @pl.when(pl.program_id(2) == pl.num_programs(2) - 1)
    def _():
        o_ref[...] = acc_ref[...].astype(o_ref.dtype)


def _matmul_bias_kernel(x_ref, w_ref, b_ref, o_ref, acc_ref):
    @pl.when(pl.program_id(2) == 0)
    def _():
        acc_ref[...] = jnp.zeros_like(acc_ref)

    acc_ref[...] += jnp.dot(x_ref[...].astype(jnp.bfloat16),
                            w_ref[...].astype(jnp.bfloat16),
                            preferred_element_type=jnp.float32)

    @pl.when(pl.program_id(2) == pl.num_programs(2) - 1)
    def _():
        o_ref[...] = (acc_ref[...] + b_ref[...]).astype(o_ref.dtype)


def pallas_matmul(x, w, bias=None, out_dtype=jnp.float32):
    """y = x @ w (+ bias).  x: (M, K), w: (K, N), bias: (1, N) f32."""
    M, K = x.shape
    K2, N = w.shape
    assert K == K2
    tm = _pick_tile(M, 512, 8)
    tn = _pick_tile(N, 256, 128)
    tk = _pick_tile(K, 1024, 128)
    grid = (M // tm, N // tn, K // tk)

    in_specs = [pl.BlockSpec((tm, tk), lambda i, j, k: (i, k)),
                pl.BlockSpec((tk, tn), lambda i, j, k: (k, j))]
    args = [x, w]
    kernel = _matmul_kernel
    if bias is not None:
        in_specs.append(pl.BlockSpec((1, tn), lambda i, j, k: (0, j)))
        args.append(bias)
        kernel = _matmul_bias_kernel

    return pl.pallas_call(
        kernel,
        out_shape=jax.ShapeDtypeStruct((M, N), out_dtype),
        grid_spec=pltpu.PrefetchScalarGridSpec(
            num_scalar_prefetch=0,
            grid=grid,
            in_specs=in_specs,
            out_specs=pl.BlockSpec((tm, tn), lambda i, j, k: (i, j)),
            scratch_shapes=[pltpu.VMEM((tm, tn), jnp.float32)]),
        compiler_params=pltpu.CompilerParams(
            dimension_semantics=("parallel", "parallel", "arbitrary"),
            vmem_limit_bytes=_VMEM_LIMIT),
    )(*args)


# ---------------------------------------------------------------------------
# Flash-style multi-head attention (online softmax, KV tiling)
# ---------------------------------------------------------------------------

def _flash_kernel(*refs, causal, use_mask, tq_tile, tk_tile):
    # refs: q (1,1,tq,e), k (1,1,tk,e), v (1,1,tk,e), [mask (tq,tk) int32],
    #       o (1,1,tq,e), scratch: m (tq,1) f32, l (tq,1) f32, acc (tq,e) f32
    if use_mask:
        q_ref, k_ref, v_ref, mask_ref, o_ref, m_sc, l_sc, acc_sc = refs
    else:
        q_ref, k_ref, v_ref, o_ref, m_sc, l_sc, acc_sc = refs
        mask_ref = None

    ki = pl.program_id(3)
    q0 = pl.program_id(2) * tq_tile
    k0 = ki * tk_tile

    @pl.when(ki == 0)
    def _():
        m_sc[...] = jnp.full_like(m_sc, -jnp.inf)
        l_sc[...] = jnp.zeros_like(l_sc)
        acc_sc[...] = jnp.zeros_like(acc_sc)

    def compute():
        q = q_ref[0, 0]          # (tq, e) bf16
        k = k_ref[0, 0]          # (tk, e) bf16
        v = v_ref[0, 0]          # (tk, e) bf16

        # q @ k^T, contracting the last dims of both (no explicit k transpose).
        s = lax.dot_general(q, k, (((1,), (1,)), ((), ())),
                            preferred_element_type=jnp.float32)   # (tq, tk)

        if causal:
            row = q0 + lax.broadcasted_iota(jnp.int32, (tq_tile, tk_tile), 0)
            col = k0 + lax.broadcasted_iota(jnp.int32, (tq_tile, tk_tile), 1)
            s = jnp.where(col > row, _NEG_BIG, s)   # mask_diagonal=False
        if use_mask:
            s = jnp.where(mask_ref[...] == 0, _MASK_VAL, s)

        m_prev = m_sc[...]
        m_new = jnp.maximum(m_prev, jnp.max(s, axis=-1, keepdims=True))
        alpha = jnp.exp(m_prev - m_new)
        p = jnp.exp(s - m_new)
        l_sc[...] = alpha * l_sc[...] + jnp.sum(p, axis=-1, keepdims=True)
        acc_sc[...] = alpha * acc_sc[...] + jnp.dot(
            p.astype(v.dtype), v, preferred_element_type=jnp.float32)
        m_sc[...] = m_new

    if causal:
        # Skip KV tiles that lie entirely in the future of this whole q tile.
        pl.when(k0 <= q0 + tq_tile - 1)(compute)
    else:
        compute()

    @pl.when(ki == pl.num_programs(3) - 1)
    def _():
        inv_l = pl.reciprocal(l_sc[...], approx=True)
        o_ref[0, 0] = (acc_sc[...] * inv_l).astype(o_ref.dtype)


def pallas_flash_mha(q, k, v, *, causal, mask=None):
    """q: (B, H, Tq, E), k/v: (B, H, T, E) (bf16), mask: (Tq, T) int32 or None.
    Returns (B, H, Tq, E) in q.dtype."""
    B, H, Tq, E = q.shape
    T = k.shape[2]
    tq_tile = _pick_tile(Tq, 256, 8)
    tk_tile = _pick_tile(T, 512, 128)
    grid = (B, H, Tq // tq_tile, T // tk_tile)

    use_mask = mask is not None
    kernel = functools.partial(_flash_kernel, causal=causal, use_mask=use_mask,
                               tq_tile=tq_tile, tk_tile=tk_tile)

    in_specs = [
        pl.BlockSpec((1, 1, tq_tile, E), lambda b, h, qi, ki: (b, h, qi, 0)),
        pl.BlockSpec((1, 1, tk_tile, E), lambda b, h, qi, ki: (b, h, ki, 0)),
        pl.BlockSpec((1, 1, tk_tile, E), lambda b, h, qi, ki: (b, h, ki, 0)),
    ]
    args = [q, k, v]
    if use_mask:
        in_specs.append(
            pl.BlockSpec((tq_tile, tk_tile), lambda b, h, qi, ki: (qi, ki)))
        args.append(mask)

    return pl.pallas_call(
        kernel,
        out_shape=jax.ShapeDtypeStruct((B, H, Tq, E), q.dtype),
        grid_spec=pltpu.PrefetchScalarGridSpec(
            num_scalar_prefetch=0,
            grid=grid,
            in_specs=in_specs,
            out_specs=pl.BlockSpec((1, 1, tq_tile, E),
                                   lambda b, h, qi, ki: (b, h, qi, 0)),
            scratch_shapes=[pltpu.VMEM((tq_tile, 1), jnp.float32),
                            pltpu.VMEM((tq_tile, 1), jnp.float32),
                            pltpu.VMEM((tq_tile, E), jnp.float32)]),
        compiler_params=pltpu.CompilerParams(
            dimension_semantics=("parallel", "parallel", "parallel", "arbitrary"),
            vmem_limit_bytes=_VMEM_LIMIT),
    )(*args)


# ---------------------------------------------------------------------------
# Module
# ---------------------------------------------------------------------------

class SelfAttention:
    """JAX/Pallas port of the PyTorch SelfAttention module."""

    def __init__(self, emb, heads=8, mask=False, key=None):
        self.emb = emb
        self.heads = heads
        self.mask = mask
        if key is None:
            key = jax.random.PRNGKey(0)
        k1, k2, k3, k4, k5 = jax.random.split(key, 5)
        # torch.nn.Linear default init: U(-1/sqrt(fan_in), 1/sqrt(fan_in))
        lim = 1.0 / (emb ** 0.5)
        self.wk = jax.random.uniform(k1, (emb, emb * heads), jnp.float32, -lim, lim)
        self.wq = jax.random.uniform(k2, (emb, emb * heads), jnp.float32, -lim, lim)
        self.wv = jax.random.uniform(k3, (emb, emb * heads), jnp.float32, -lim, lim)
        lim_u = 1.0 / ((heads * emb) ** 0.5)
        self.wu = jax.random.uniform(k4, (heads * emb, emb), jnp.float32, -lim_u, lim_u)
        self.bu = jax.random.uniform(k5, (1, emb), jnp.float32, -lim_u, lim_u)

        # bf16 MXU copies; 1/e^0.25 scale of q and k folded into the weights,
        # q|k|v fused so x is read from HBM only once during projection.
        scale = jnp.float32(float(emb) ** (-0.25))
        self.w_qkv_bf16 = jnp.concatenate(
            [self.wq * scale, self.wk * scale, self.wv], axis=1).astype(jnp.bfloat16)
        self.w_kv_bf16 = jnp.concatenate(
            [self.wk * scale, self.wv], axis=1).astype(jnp.bfloat16)
        self.wq_bf16 = (self.wq * scale).astype(jnp.bfloat16)
        self.wu_bf16 = self.wu.astype(jnp.bfloat16)

    def __call__(self, x, mask, encoder_output=None):
        b, t, e = x.shape
        h = self.heads
        he = h * e
        x2d = x.reshape(b * t, e)

        if encoder_output is None:
            tq = t
            qkv = pallas_matmul(x2d, self.w_qkv_bf16, out_dtype=jnp.bfloat16)
            # One amortized XLA transpose to per-head layout (B, H, T, E).
            qkv = qkv.reshape(b, t, 3, h, e).transpose(2, 0, 3, 1, 4)
            q, k, v = qkv[0], qkv[1], qkv[2]
        else:
            _, tq, _ = encoder_output.shape
            kv = pallas_matmul(x2d, self.w_kv_bf16, out_dtype=jnp.bfloat16)
            kv = kv.reshape(b, t, 2, h, e).transpose(2, 0, 3, 1, 4)
            k, v = kv[0], kv[1]
            q = pallas_matmul(encoder_output.reshape(b * tq, e), self.wq_bf16,
                              out_dtype=jnp.bfloat16)
            q = q.reshape(b, tq, h, e).transpose(0, 2, 1, 3)

        mask_i = None
        if mask is not None:
            mask_i = jnp.broadcast_to(mask, (tq, t)).astype(jnp.int32)

        out = pallas_flash_mha(q, k, v, causal=self.mask, mask=mask_i)  # (b,h,tq,e)
        out2d = out.transpose(0, 2, 1, 3).reshape(b * tq, he)           # (b*tq, h*e)
        y = pallas_matmul(out2d, self.wu_bf16, bias=self.bu, out_dtype=jnp.float32)
        return y.reshape(b, tq, e)


# ---------------------------------------------------------------------------
# Pure-JAX f32 reference (mirrors the PyTorch forward exactly)
# ---------------------------------------------------------------------------

def reference_forward(module, x, mask, encoder_output=None):
    b, t, e = x.shape
    h = module.heads
    x2d = x.reshape(b * t, e)
    keys = (x2d @ module.wk).reshape(b, t, h, e)
    values = (x2d @ module.wv).reshape(b, t, h, e)
    if encoder_output is not None:
        _, tq, _ = encoder_output.shape
        queries = (encoder_output.reshape(b * tq, e) @ module.wq).reshape(b, tq, h, e)
    else:
        tq = t
        queries = (x2d @ module.wq).reshape(b, tq, h, e)

    keys = keys.transpose(0, 2, 1, 3).reshape(b * h, t, e) / (e ** 0.25)
    queries = queries.transpose(0, 2, 1, 3).reshape(b * h, tq, e) / (e ** 0.25)
    values = values.transpose(0, 2, 1, 3).reshape(b * h, t, e)

    dot = jnp.einsum('bqe,bke->bqk', queries, keys)
    if module.mask:
        row = lax.broadcasted_iota(jnp.int32, (tq, t), 0)
        col = lax.broadcasted_iota(jnp.int32, (tq, t), 1)
        dot = jnp.where((col > row)[None, :, :], -jnp.inf, dot)
    if mask is not None:
        dot = jnp.where(mask[None, :, :] == 0, -1.0e9, dot)
    dot = jax.nn.softmax(dot, axis=-1)
    out = jnp.einsum('bqk,bke->bqe', dot, values)
    out = out.reshape(b, h, tq, e).transpose(0, 2, 1, 3).reshape(b * tq, h * e)
    return (out @ module.wu + module.bu).reshape(b, tq, e)


# ---------------------------------------------------------------------------
# Main
# ---------------------------------------------------------------------------

if __name__ == "__main__":
    key = jax.random.PRNGKey(0)
    k_x, k_m, k_p1, k_p2, k_enc = jax.random.split(key, 5)

    b, t, emb, heads = 2, 8, 32, 4
    x = jax.random.normal(k_x, (b, t, emb), dtype=jnp.float32)

    # bf16 MXU operands (f32 accumulation) -> compare against the f32
    # reference at a mixed-precision tolerance.
    RTOL, ATOL = 2e-2, 2e-2

    # --- test 1: user mask (diag forced unmasked), non-causal ----------------
    mask = (jax.random.uniform(k_m, (t, t)) > 0.3).astype(jnp.int32)
    mask = jnp.maximum(mask, jnp.eye(t, dtype=jnp.int32))

    module = SelfAttention(emb, heads=heads, mask=False, key=k_p1)
    out = jax.block_until_ready(module(x, mask))
    ref = reference_forward(module, x, mask)
    assert out.shape == (b, t, emb)
    assert jnp.allclose(out, ref, rtol=RTOL, atol=ATOL), "mismatch (masked path)"

    # --- test 2: causal masking, no user mask ---------------------------------
    module_c = SelfAttention(emb, heads=heads, mask=True, key=k_p2)
    out_c = jax.block_until_ready(module_c(x, None))
    ref_c = reference_forward(module_c, x, None)
    assert jnp.allclose(out_c, ref_c, rtol=RTOL, atol=ATOL), "mismatch (causal path)"

    # --- test 3: cross-attention (queries from encoder_output) ----------------
    tq = 16
    enc = jax.random.normal(k_enc, (b, tq, emb), dtype=jnp.float32)
    out_x = jax.block_until_ready(module(x, None, encoder_output=enc))
    ref_x = reference_forward(module, x, None, encoder_output=enc)
    assert out_x.shape == (b, tq, emb)
    assert jnp.allclose(out_x, ref_x, rtol=RTOL, atol=ATOL), "mismatch (cross path)"

    print("KERNEL_OK")
</pallas_src>

<mosaic_0001>
module attributes {stable_mosaic.version = 11 : i64} {
  func.func @_matmul_kernel(%arg0: i32, %arg1: i32, %arg2: i32, %arg3: memref<16x32xf32, #tpu.memory_space<vmem>>, %arg4: memref<32x128xbf16, #tpu.memory_space<vmem>>, %arg5: memref<16x128xbf16, #tpu.memory_space<vmem>>, %arg6: memref<16x128xf32, #tpu.memory_space<vmem>>) attributes {dimension_semantics = [#tpu.dimension_semantics<parallel>, #tpu.dimension_semantics<parallel>, #tpu.dimension_semantics<arbitrary>], iteration_bounds = array<i64: 1, 3, 1>, scalar_prefetch = 0 : i64, scratch_operands = 1 : i64, tpu.core_type = #tpu.core_type<tc>, window_params = [{transform_indices = @transform_0, window_bounds = array<i64: 16, 32>}, {transform_indices = @transform_1, window_bounds = array<i64: 32, 128>}, {transform_indices = @transform_2, window_bounds = array<i64: 16, 128>}]} {
    %c0_i32 = arith.constant 0 : i32
    %0 = arith.cmpi eq, %arg2, %c0_i32 : i32
    %1 = arith.extui %0 : i1 to i32
    %c0_i32_0 = arith.constant 0 : i32
    %2 = arith.cmpi ne, %1, %c0_i32_0 : i32
    scf.if %2 {
      %cst_10 = arith.constant 0.000000e+00 : f32
      %13 = vector.broadcast %cst_10 : f32 to vector<16x128xf32>
      %c0_11 = arith.constant 0 : index
      %c0_12 = arith.constant 0 : index
      %14 = vector.load %arg6[%c0_11, %c0_12] : memref<16x128xf32, #tpu.memory_space<vmem>>, vector<16x128xf32>
      tpu.vector_store %arg6[%c0_11, %c0_12], %13 {strides = array<i32>} : memref<16x128xf32, #tpu.memory_space<vmem>>, vector<16x128xf32>,
    } else {
    }
    %c0 = arith.constant 0 : index
    %c0_1 = arith.constant 0 : index
    %3 = vector.load %arg6[%c0, %c0_1] : memref<16x128xf32, #tpu.memory_space<vmem>>, vector<16x128xf32>
    %c0_2 = arith.constant 0 : index
    %c0_3 = arith.constant 0 : index
    %4 = vector.load %arg3[%c0_2, %c0_3] : memref<16x32xf32, #tpu.memory_space<vmem>>, vector<16x32xf32>
    %5 = arith.truncf %4 : vector<16x32xf32> to vector<16x32xbf16>
    %c0_4 = arith.constant 0 : index
    %c0_5 = arith.constant 0 : index
    %6 = vector.load %arg4[%c0_4, %c0_5] : memref<32x128xbf16, #tpu.memory_space<vmem>>, vector<32x128xbf16>
    %cst = arith.constant dense<0.000000e+00> : vector<16x128xf32>
    %7 = tpu.matmul %5, %6, %cst {dimension_numbers = #tpu.dot_dimension_numbers<[1], [0], [0], [1], [0, 0, 1, 1], [], []>} : vector<16x32xbf16>, vector<32x128xbf16>, vector<16x128xf32> -> vector<16x128xf32>
    %8 = arith.addf %3, %7 : vector<16x128xf32>
    %c0_6 = arith.constant 0 : index
    %c0_7 = arith.constant 0 : index
    %9 = vector.load %arg6[%c0_6, %c0_7] : memref<16x128xf32, #tpu.memory_space<vmem>>, vector<16x128xf32>
    tpu.vector_store %arg6[%c0_6, %c0_7], %8 {strides = array<i32>} : memref<16x128xf32, #tpu.memory_space<vmem>>, vector<16x128xf32>,
    %c0_i32_8 = arith.constant 0 : i32
    %10 = arith.cmpi eq, %arg2, %c0_i32_8 : i32
    %11 = arith.extui %10 : i1 to i32
    %c0_i32_9 = arith.constant 0 : i32
    %12 = arith.cmpi ne, %11, %c0_i32_9 : i32
    scf.if %12 {
      %c0_10 = arith.constant 0 : index
      %c0_11 = arith.constant 0 : index
      %13 = vector.load %arg6[%c0_10, %c0_11] : memref<16x128xf32, #tpu.memory_space<vmem>>, vector<16x128xf32>
      %14 = arith.truncf %13 : vector<16x128xf32> to vector<16x128xbf16>
      %c0_12 = arith.constant 0 : index
      %c0_13 = arith.constant 0 : index
      %15 = vector.load %arg5[%c0_12, %c0_13] : memref<16x128xbf16, #tpu.memory_space<vmem>>, vector<16x128xbf16>
      tpu.vector_store %arg5[%c0_12, %c0_13], %14 {strides = array<i32>} : memref<16x128xbf16, #tpu.memory_space<vmem>>, vector<16x128xbf16>,
    } else {
    }
    return
  }
  func.func @transform_0(%arg0: i32, %arg1: i32, %arg2: i32) -> (i32, i32) {
    %c0_i32 = arith.constant 0 : i32
    return %arg0, %arg2 : i32, i32
  }
  func.func @transform_1(%arg0: i32, %arg1: i32, %arg2: i32) -> (i32, i32) {
    %c0_i32 = arith.constant 0 : i32
    return %arg2, %arg1 : i32, i32
  }
  func.func @transform_2(%arg0: i32, %arg1: i32, %arg2: i32) -> (i32, i32) {
    %c0_i32 = arith.constant 0 : i32
    return %arg0, %arg1 : i32, i32
  }
}

</mosaic_0001>

<bundles_post_ra>
// kernel: tpu_custom_call.1
= control target key start
LH: loop header
LB: loop body
LE: loop exit
PB: predicated region body
PF: predicated region fallthrough
CT: control target
= control target key end

     0   :  { %7 = vsyncpa [#allocation4], 0  ;;  %s937_s0 = inlined_call_operand.hbm [shape: f32[16,32], index: 0, kind: input, shape index: {}]   ;;  %s938_s1 = inlined_call_operand.hbm [shape: bf16[32,384], index: 1, kind: input, shape index: {}]   ;;  %s939_s2 = inlined_call_operand.hbm [shape: bf16[16,384], index: 2, kind: output, shape index: {}]  }
   0x1   :  { %8 = vsyncpa [#allocation7], 0 }
   0x2   :  { %10 = vsyncpa [#allocation7 + $0x1], 0 }
   0x3   :  { %11 = vsyncpa [#allocation5], 0 }
   0x4   :  { %13 = vsyncpa [#allocation5 + $0x1], 0  ;;  %s725_s9 = smov 0   ;;  %s727_s10 = smov 0  }
   0x5   :  { %s729_s11 = smov 0   ;;  %s731_s12 = smov 0  }
   0x6   :  { %s733_s13 = smov 0   ;;  %s735_s14 = smov 0  }
   0x7 LB: > { %s428_s15 = sadd.s32 4294967295, %s695_s14   ;;  %s429_s16 = sadd.s32 4294967294, %s695_s14   ;;  %s695_s14 = sphi %s735_s14, %s19_s14   ;;  %s691_s13 = sphi %s733_s13, %s964_s13   ;;  %s687_s12 = sphi %s731_s12, %s963_s12   ;;  %s683_s11 = sphi %s729_s11, %s962_s11   ;;  %s679_s10 = sphi %s727_s10, %s961_s10   ;;  %s675_s9 = sphi %s725_s9, %s960_s9  }
   0x8   : > { %p82_p0 = scmp.ne.s32.totalorder %s683_s11, %s679_s10  ;;  %p83_p1 = scmp.eq.s32.totalorder %s695_s14, 0 }
   0x9   : > { %p88_p2 = scmp.ne.s32.totalorder %s679_s10, %s675_s9  ;;  %p762_p3 = scmp.eq.s32.totalorder %s428_s15, 0 }
   0xa   : > { %p766_p4 = por %p83_p1, %p82_p0  ;;  %p114_p5 = scmp.eq.s32.totalorder %s428_s15, 2 }
   0xb   : > { %s946_s17 = scalar_select %p762_p3, 1, 0 }
   0xc   : > { %p772_p6 = por %p762_p3, %p88_p2  ;;  %p120_p7 = scmp.eq.s32.totalorder %s429_s16, 2 }
   0xd   : > { %p776_p8 = por %p114_p5, %p82_p0  ;;  %p430_p9 = scmp.ge.s32.totalorder %s695_s14, 1 }
   0xe   : > { %s948_s19 = scalar_select %p772_p6, 1, 0 }
   0xf   : > { %s949_s20 = scalar_select %p776_p8, 1, 0 }
  0x10   : > { %p781_p10 = por %p120_p7, %p88_p2  ;;  %p127_p11 = scmp.lt.s32.totalorder %s695_s14, 4 }
  0x11   : > { %s697_s23 = smov [#allocation3]   ;;  %p487_p0 = scmp.lt.s32.totalorder %s695_s14, 3 }
  0x12   : > { %s950_s21 = scalar_select %p781_p10, 1, 0 }
  0x13   : > { %p786_p12 = pnand %p430_p9, %p127_p11  ;;  %s143_s24 = sshll.u32 %s697_s23, 4  ;;  %s144_s24 = int_to_ptr.vmem [resolvable:$true] %s143_s24 }
  0x14   : > { %p801_p2 = pnand %p487_p0, %p766_p4  ;;  %s34_s27 = sadd.s32 1, %s691_s13 }
  0x15   : > { %s951_s22 = scalar_select %p786_p12, 1, 0 }
  0x16   : > { %p474_p13 = pneg %p786_p12  ;;  %s551_s30 = scalar_lea.hbm %s937_s0, 256 }
  0x17   : > { %s953_s26 = scalar_select %p801_p2, 1, 0 }
  0x18   : > { %p795_p1 = pnand %p474_p13, %p762_p3  ;;  %p552_p5 = scmp.ne.s32.totalorder %s937_s0, %s551_s30 }
  0x19   : > { %p558_p4 = scmp.lt.u32.totalorder %s551_s30, %s937_s0 }
  0x1a   : > { %p553_p7 = pneg %p795_p1 }
  0x1c   : > { %p554_p9 = pnand %p553_p7, %p552_p5 }
  0x1e   : > { %p555_p11 = pneg %p554_p9 }
  0x20   : > { %p560_p13 = pnand %p558_p4, %p555_p11 }
  0x22   : > { %563 = shalt.err (!%p560_p13)
}
  0x23   : > { %s564_s7 = scalar_lea.vmem %s144_s24, 256  ;;  %p572_p6 = scmp.lt.s32.totalorder %s144_s24, %s144_s24 }
  0x24   : > { %p565_p0 = scmp.ne.s32.totalorder %s144_s24, %s564_s7  ;;  %p573_p3 = scmp.lt.s32.totalorder %s564_s7, %s564_s7 }
  0x26   : > { %p567_p10 = pnand %p565_p0, %p553_p7  ;;  %p574_p12 = por %p573_p3, %p572_p6 }
  0x28   : > { %p568_p8 = pneg %p567_p10 }
  0x2a   : > { %p575_p2 = pnand %p574_p12, %p568_p8 }
  0x2c   : > { %578 = shalt.err (!%p575_p2)
}
  0x2d   : > { %s698_s8 = smov 128   ;;  %s699_s15 = smov 8  }
  0x2e   : > { %477 = dma.hbm_to_vmem [thread:$0]  (!%p795_p1), %s937_s0, 256, %s144_s24, [#allocation4], %s698_s8, %s698_s8, %s699_s15  }
  0x2f   : > { %p36_p5 = scmp.ge.s32.totalorder %s34_s27, 3  ;;  %s75_s23 = sadd.s32 1, %s683_s11 }
  0x30   : > { %s157_s28 = sand.u32 1, %s683_s11   ;;  %s434_s3 = sshll.u32 %s691_s13, 6 }
  0x31   : > { %s966_s27 = smov (%p36_p5, %s34_s27), 0  ;;  %s433_s29 = sshll.u32 %s157_s28, 4 }
  0x32   : > { %s71_s30 = ssub.s32 %s691_s13, %s966_s27  ;;  %s832_s25 = scalar_lea.hbm %s938_s1, %s434_s3 }
  0x33   : > { %p73_p3 = scmp.eq.s32.totalorder %s71_s30, 0  ;;  %s161_s24 = scalar_lea.vmem [#allocation6], %s433_s29 }
  0x34   : > { %s170_s6 = sshll.u32 %s161_s24, 4  ;;  %s839_s8 = scalar_lea.sflag [#allocation7], %s157_s28  ;;  %s837_s6 = int_to_ptr.vmem [resolvable:$true] %s170_s6 }
  0x35   : > { %s835_s7 = scalar_select %p73_p3, %s683_s11, %s75_s23  }
  0x36   : > { %s579_s15 = scalar_lea.hbm %s832_s25, 256  ;;  %p954_p8 = scmp.ne.s32.totalorder %s953_s26, 0 }
  0x37   : > { %p580_p6 = scmp.ne.s32.totalorder %s832_s25, %s579_s15  ;;  %s584_s30 = scalar_lea.hbm %s938_s1, 768 }
  0x38   : > { %p581_p10 = pneg %p954_p8  ;;  %p585_p2 = scmp.lt.u32.totalorder %s832_s25, %s938_s1 }
  0x39   : > { %p586_p7 = scmp.lt.u32.totalorder %s584_s30, %s579_s15  ;;  %p588_p11 = scmp.lt.u32.totalorder %s579_s15, %s832_s25 }
  0x3a   : > { %p582_p12 = pnand %p581_p10, %p580_p6 }
  0x3b   : > { %p587_p9 = por %p586_p7, %p585_p2 }
  0x3c   : > { %p583_p1 = pneg %p582_p12 }
  0x3d   : > { %p589_p4 = por %p588_p11, %p587_p9 }
  0x3f   : > { %p590_p13 = pnand %p589_p4, %p583_p1 }
  0x41   : > { %593 = shalt.err (!%p590_p13)
}
  0x42   : > { %s594_s23 = scalar_lea.vmem %s837_s6, 256  ;;  %s700_s28 = smov [#allocation6]  }
  0x43   : > { %p595_p0 = scmp.ne.s32.totalorder %s837_s6, %s594_s23  ;;  %s599_s4 = sshll.u32 %s700_s28, 4  ;;  %s600_s4 = int_to_ptr.vmem [resolvable:$false] %s599_s4 }
  0x44   : > { %s601_s5 = scalar_lea.vmem %s600_s4, 512  ;;  %p602_p6 = scmp.lt.s32.totalorder %s837_s6, %s600_s4 }
  0x45   : > { %p597_p5 = pnand %p595_p0, %p581_p10  ;;  %p603_p12 = scmp.lt.s32.totalorder %s601_s5, %s594_s23 }
  0x47   : > { %p598_p3 = pneg %p597_p5  ;;  %p604_p2 = por %p603_p12, %p602_p6 }
  0x49   : > { %p605_p7 = pnand %p604_p2, %p598_p3 }
  0x4b   : > { %608 = shalt.err (!%p605_p7)
}
  0x4c   : > { %s701_s24 = smov 192   ;;  %s702_s15 = smov 64  }
  0x4d   : > { %s703_s16 = smov 4   ;;  %p955_p10 = scmp.ne.s32.totalorder %s951_s22, 0 }
  0x4e   : > { %481 = dma.hbm_to_vmem [thread:$0]  (!%p954_p8), %s832_s25, 256, %s837_s6, %s839_s8, %s701_s24, %s702_s15, %s703_s16  }
  0x4f   : > { %182 = sbr.rel (%p955_p10) target bundleno = 332 (0x14c), region = 28  ;;  %p956_p1 = scmp.ne.s32.totalorder (!%p955_p10), %s946_s17, 0 }
  0x56   : > { %662 = dma.done.wait (%p956_p1), [#allocation4], 256  }
  0x57   : > { %664 = vsyncadd (%p956_p1), [#allocation4], 4294967040  ;;  %s874_s18 = sand.u32 1, %s679_s10   ;;  %p957_p9 = scmp.ne.s32.totalorder %s948_s19, 0 }
  0x58   : > { %s437_s30 = sshll.u32 %s874_s18, 4  ;;  %s189_s29 = scalar_lea.sflag [#allocation7], %s874_s18 }
  0x59   : > { %s192_s3 = scalar_lea.vmem [#allocation6], %s437_s30 }
  0x5a   : > { %666 = dma.done.wait (%p957_p9), %s189_s29, 256  }
  0x5b   : > { %668 = vsyncadd (%p957_p9), %s189_s29, 4294967040  ;;  %v704_v0 = vmov 0.0   ;;  %vm705_vm0 = vmmov 0   ;;  %v549_v1 = vld [vmem:[%s192_s3] sm:$0xff]   ;;  %v550_v2 = vld [vmem:[%s192_s3 + $0x8] sm:$0xff]   ;;  %vm244_vm1 = vcmask 261120  }
  0x5c   : > { %458 = vmatprep.subr.bf16.mxu0 %v704_v0  ;;  %462 = vmatprep.mubr.msk.bf16.mxu0 %vm705_vm0, %v704_v0  ;;  %v225_v3 = vld [vmem:[#allocation3] sm:$0xff]  ;;  %v226_v4 = vld [vmem:[#allocation3 + $0x8] sm:$0xff]  ;;  %s438_s17 = sshll.u32 %s874_s18, 3  ;;  %s445_s26 = sshll.u32 %s687_s12, 6 }
  0x5d   : > { %459 = vmatpush3.bf16.msra.mxu0 %v549_v1  ;;  %v227_v5 = vpack.c.bf16 %v226_v4, %v225_v3  ;;  %s212_s19 = scalar_lea.vmem [#allocation8], %s438_s17  ;;  %s889_s8 = scalar_lea.hbm %s939_s2, %s445_s26 }
  0x5e   : > { %460 = vmatprep.subr.bf16.mxu0 %v704_v0  ;;  %s324_s22 = sshll.u32 %s212_s19, 4  ;;  %s309_s23 = scalar_lea.sflag [#allocation5], %s874_s18  ;;  %s884_s22 = int_to_ptr.vmem [resolvable:$true] %s324_s22 }
  0x5f   : > { %s609_s28 = scalar_lea.vmem %s884_s22, 128  ;;  %p958_p11 = scmp.ne.s32.totalorder %s949_s20, 0 }
  0x60   : > { %p610_p8 = scmp.ne.s32.totalorder %s884_s22, %s609_s28  ;;  %s706_s12 = smov [#allocation8]  }
  0x61   : > { %461 = vmatpush3.bf16.msra.mxu0 %v550_v2  ;;  %s613_s4 = sshll.u32 %s706_s12, 4  ;;  %s614_s4 = int_to_ptr.vmem [resolvable:$false] %s613_s4 }
  0x62   : > { %p611_p4 = pnand %p610_p8, %p958_p11  ;;  %s615_s5 = scalar_lea.vmem %s614_s4, 256 }
  0x63   : > { %p616_p0 = scmp.lt.s32.totalorder %s884_s22, %s614_s4  ;;  %p617_p5 = scmp.lt.s32.totalorder %s615_s5, %s609_s28 }
  0x64   : > { %463 = vmatmul.mubr.msk.bf16.vlgmr.msra.gmra.mrb[0].mxu0 %vm244_vm1, %v227_v5  ;;  %p612_p13 = pneg %p611_p4 }
  0x65   : > { %p618_p3 = por %p617_p5, %p616_p0 }
  0x67   : > { %p619_p6 = pnand %p618_p3, %p612_p13 }
 0x137   : > { %v282_v6 = vpop.f32.mrb[0].mxu0 }
 0x138   : > { %v464_v7 = vpop.f32.mrb[1].mxu0 }
 0x139   : > { %v285_v8 = vpop.f32.mrb[2].mxu0 }
 0x13a   : > { %v453_v9 = vpack.c.bf16 %v285_v8, %v282_v6  ;;  %v465_v10 = vpop.f32.mrb[3].mxu0 }
 0x13c   : > { %454 = vst [vmem:[%s212_s19] sm:$0xff] %v453_v9  }
 0x13d   : > { %622 = shalt.err (!%p619_p6)
}
 0x13e   : > { %s623_s24 = scalar_lea.hbm %s889_s8, 128  ;;  %s627_s30 = scalar_lea.hbm %s939_s2, 384 }
 0x13f   : > { %p624_p12 = scmp.ne.s32.totalorder %s889_s8, %s623_s24  ;;  %p628_p10 = scmp.lt.u32.totalorder %s889_s8, %s939_s2 }
 0x140   : > { %p629_p1 = scmp.lt.u32.totalorder %s627_s30, %s623_s24  ;;  %p631_p8 = scmp.lt.u32.totalorder %s623_s24, %s889_s8 }
 0x141   : > { %p625_p2 = pnand %p624_p12, %p958_p11 }
 0x142   : > { %p630_p9 = por %p629_p1, %p628_p10 }
 0x143   : > { %p626_p7 = pneg %p625_p2 }
 0x144   : > { %p632_p4 = por %p631_p8, %p630_p9 }
 0x146   : > { %p633_p13 = pnand %p632_p4, %p626_p7 }
 0x148   : > { %636 = shalt.err (!%p633_p13)
}
 0x149   : > { %s707_s17 = smov 64   ;;  %s708_s19 = smov 192  }
 0x14a   : > { %s709_s26 = smov 4  }
 0x14b   : > { %472 = dma.vmem_to_hbm [thread:$0]  (%p958_p11), %s884_s22, 128, %s889_s8, %s309_s23, %s707_s17, %s708_s19, %s709_s26  }
 0x14c PF: > { %p489_p0 = scmp.ge.s32.totalorder %s695_s14, 2  ;;  %s339_s25 = sand.u32 1, %s675_s9  }
 0x14d   : > { %p959_p5 = scmp.ne.s32.totalorder %s950_s21, 0  ;;  %s340_s6 = scalar_lea.sflag [#allocation5], %s339_s25 }
 0x14f   : > { %p483_p3 = pnand %p489_p0, %p959_p5 }
 0x151   : > { %670 = dma.done.wait (!%p483_p3), %s340_s6, 128  }
 0x152   : > { %672 = vsyncadd (!%p483_p3), %s340_s6, 4294967168  ;;  %s19_s14 = sadd.s32 1, %s695_s14   ;;  %s960_s9 = smov %s679_s10 }
 0x153   : > { %p16_p6 = scmp.ge.s32.totalorder %s19_s14, 5   ;;  %s961_s10 = smov %s683_s11 }
 0x154   : > { %s962_s11 = smov %s835_s7  ;;  %s963_s12 = smov %s691_s13 }
 0x155   : > { %s964_s13 = smov %s966_s27  ;;  %18 = sbr.rel (!%p16_p6) target bundleno = 7 (0x7), region = 87 }
 0x15c   :  { %345 = vsyncpa [#allocation4], 1 }
 0x15d   :  { %347 = vsyncpa [#allocation4 + $0x1], 1 }
 0x15e   :  { %348 = vsyncpa [#allocation7], 1 }
 0x15f   :  { %350 = vsyncpa [#allocation7 + $0x1], 1 }
 0x160   :  { %351 = vsyncpa [#allocation5], 1 }
 0x161   :  { %353 = vsyncpa [#allocation5 + $0x1], 1 }

</bundles_post_ra>
